<compile_context>
chip_gen: v5e
topology: v5e:2x2
jax: 0.10.0
libtpu: 0.0.40
codegen_flags: <defaults>
</compile_context>

<pallas_src>
from functools import partial

import numpy as np

import jax
import jax.numpy as jnp
from jax.experimental import pallas as pl
from jax.experimental.pallas import tpu as pltpu


# ----------------------------------------------------------------------------
# Fused kernel.
#   tok_ref   : (B*L, 1)                 int32  token ids (flattened)
#   embed_ref : (V, D)                   f32    embedding table
#   par_ref   : (KD + T_pad + C_all + 8, C_all) f32 packed constants:
#                 rows [0, KD)                        -> W_unf   (K_max*D, C_all)
#                 rows [KD, KD+T_pad)                 -> mask+bias (T_pad, C_all)
#                 rows [KD+T_pad, KD+T_pad+C_all)     -> linear W (first C cols)
#                 row   KD+T_pad+C_all                -> linear b (first C cols)
#   out_ref   : (B, C)                   f32    logits
# ----------------------------------------------------------------------------
def _cnn_kernel(tok_ref, embed_ref, par_ref, out_ref, *,
                B, L, K_max, T_pad, C_all, C, KD):
    BL = tok_ref.shape[0]
    V, D = embed_ref.shape
    L_pad = T_pad + K_max - 1

    # ---- embedding lookup fused as a one-hot matmul on the MXU -------------
    tok = tok_ref[...]                                           # (B*L, 1)
    iota = jax.lax.broadcasted_iota(jnp.int32, (BL, V), 1)
    onehot = (tok == iota).astype(jnp.float32)                   # (B*L, V)
    emb = jnp.dot(onehot, embed_ref[...],
                  preferred_element_type=jnp.float32).reshape(B, L, D)

    # ---- zero-pad the time axis as a value (stays in vregs, no scratch) ----
    if L_pad > L:
        emb = jnp.concatenate(
            [emb, jnp.zeros((B, L_pad - L, D), jnp.float32)], axis=1)

    # ---- im2col: lane-concat the K_max shifted windows, ONE MXU matmul -----
    x_unf = jnp.concatenate(
        [emb[:, k:k + T_pad, :] for k in range(K_max)],
        axis=2).reshape(B * T_pad, KD)                           # (B*T_pad, K*D)
    conv = jnp.dot(x_unf, par_ref[0:KD, :],
                   preferred_element_type=jnp.float32)           # (B*T_pad, C_all)

    # ---- mask invalid/padded time steps (conv bias folded into the mask), --
    # ---- single cross-sublane max over time, then ReLU ----------------------
    maskb = par_ref[KD:KD + T_pad, :]                            # (T_pad, C_all)
    conv3 = conv.reshape(B, T_pad, C_all) + maskb                # -inf on invalid
    pooled = jnp.maximum(jnp.max(conv3, axis=1), 0.0)            # (B, C_all)

    # ---- final linear layer (dropout is identity in eval mode) -------------
    r0 = KD + T_pad
    lin_w = par_ref[r0:r0 + C_all, 0:C]                          # (C_all, C)
    lin_b = par_ref[r0 + C_all:r0 + C_all + 1, 0:C]              # (1, C)
    out_ref[...] = (jnp.dot(pooled, lin_w,
                            preferred_element_type=jnp.float32) + lin_b)


# ----------------------------------------------------------------------------
# Wrapper: one fused pallas_call, full-array BlockSpecs, everything in VMEM.
# ----------------------------------------------------------------------------
@partial(jax.jit, static_argnames=("K_max", "T_pad", "C_all", "C", "KD"))
def cnn_forward(tokens, embed_w, params, *, K_max, T_pad, C_all, C, KD):
    B, L = tokens.shape
    V, D = embed_w.shape
    tok_flat = tokens.reshape(B * L, 1).astype(jnp.int32)

    kernel = partial(_cnn_kernel, B=B, L=L, K_max=K_max, T_pad=T_pad,
                     C_all=C_all, C=C, KD=KD)

    return pl.pallas_call(
        kernel,
        out_shape=jax.ShapeDtypeStruct((B, C), jnp.float32),
        grid=(1,),
        in_specs=[
            pl.BlockSpec((B * L, 1), lambda i: (0, 0)),
            pl.BlockSpec((V, D), lambda i: (0, 0)),
            pl.BlockSpec(params.shape, lambda i: (0, 0)),
        ],
        out_specs=pl.BlockSpec((B, C), lambda i: (0, 0)),
        compiler_params=pltpu.CompilerParams(
            dimension_semantics=("arbitrary",)),
    )(tok_flat, embed_w, params)


# ----------------------------------------------------------------------------
# Host-side parameter packing:
#   * zero-pad conv weights to K_max, concat branches, flatten to (K_max*D, C_all)
#   * build (T_pad, C_all) time-validity mask with the conv bias folded in
#     (valid rows = bias, invalid/padded rows = -inf)
#   * width-pad the linear layer and stack everything into a single f32 slab
# ----------------------------------------------------------------------------
def pack_params(conv_ws, conv_bs, lin_w, lin_b, L):
    Ks = [int(w.shape[0]) for w in conv_ws]
    Cos = [int(w.shape[2]) for w in conv_ws]
    K_max, K_min = max(Ks), min(Ks)
    D = int(conv_ws[0].shape[1])
    C_all = sum(Cos)
    C = int(lin_w.shape[1])
    assert L >= K_max, "sequence length must be >= max kernel size"
    assert C <= C_all, "packing assumes n_label <= total conv channels"

    T_max = L - K_min + 1
    T_pad = -(-T_max // 8) * 8                      # round up to sublane multiple
    KD = K_max * D

    # conv weights -> W_unf
    w_np = [np.asarray(w, np.float32) for w in conv_ws]
    padded = [np.pad(w, ((0, K_max - w.shape[0]), (0, 0), (0, 0))) for w in w_np]
    w_unf = np.concatenate(padded, axis=-1).reshape(KD, C_all)

    # validity mask with folded bias (every column has >= 1 valid row)
    cols = []
    for K, Co, b in zip(Ks, Cos, conv_bs):
        T = L - K + 1
        valid = np.arange(T_pad) < T
        col = np.where(valid[:, None],
                       np.asarray(b, np.float32).reshape(1, Co),
                       np.float32(-np.inf)).astype(np.float32)
        cols.append(col)
    maskb = np.concatenate(cols, axis=1)            # (T_pad, C_all)

    # linear layer, width-padded to C_all columns
    lin_w_pad = np.zeros((C_all, C_all), np.float32)
    lin_w_pad[:, :C] = np.asarray(lin_w, np.float32)
    lin_b_pad = np.zeros((8, C_all), np.float32)    # 8 rows to keep slab 8-aligned
    lin_b_pad[0, :C] = np.asarray(lin_b, np.float32).reshape(-1)

    params = np.concatenate([w_unf, maskb, lin_w_pad, lin_b_pad], axis=0)
    meta = dict(K_max=K_max, T_pad=T_pad, C_all=C_all, C=C, KD=KD)
    return jnp.asarray(params), meta


# ----------------------------------------------------------------------------
# Pure-JAX reference (same semantics as the PyTorch module, eval mode).
# ----------------------------------------------------------------------------
def reference_forward(tokens, embed_w, conv_ws, conv_bs, lin_w, lin_b):
    emb = jnp.take(embed_w, tokens, axis=0)                    # (B, L, D)
    L = emb.shape[1]
    pooled = []
    for w, b in zip(conv_ws, conv_bs):                         # w: (K, D, Co)
        K = w.shape[0]
        T = L - K + 1
        conv = jnp.stack(
            [sum(emb[:, t + k, :] @ w[k] for k in range(K)) for t in range(T)],
            axis=1) + b                                        # (B, T, Co)
        pooled.append(jax.nn.relu(conv).max(axis=1))           # (B, Co)
    feat = jnp.concatenate(pooled, axis=1)
    return feat @ lin_w + lin_b


if __name__ == "__main__":
    # Hyperparameters (small, consistent with the module's __init__)
    V = 64          # n_embed (vocab size)
    D = 32          # embed_dim
    C = 4           # n_label
    Co = 8          # kernel_num
    Ks = (3, 4, 5)  # kernel_size
    B = 2           # batch
    L = 16          # sequence length

    key = jax.random.PRNGKey(0)
    keys = jax.random.split(key, 4 + 2 * len(Ks))

    embed_w = jax.random.normal(keys[0], (V, D), dtype=jnp.float32)
    conv_ws, conv_bs = [], []
    for i, K in enumerate(Ks):
        # PyTorch conv weight is (Co, 1, K, D); stored here as (K, D, Co)
        conv_ws.append(0.1 * jax.random.normal(keys[1 + 2 * i], (K, D, Co),
                                               dtype=jnp.float32))
        conv_bs.append(0.1 * jax.random.normal(keys[2 + 2 * i], (1, Co),
                                               dtype=jnp.float32))
    # PyTorch linear weight is (C, len(Ks)*Co); stored here as (len(Ks)*Co, C)
    lin_w = 0.1 * jax.random.normal(keys[-3], (len(Ks) * Co, C),
                                    dtype=jnp.float32)
    lin_b = 0.1 * jax.random.normal(keys[-2], (1, C), dtype=jnp.float32)
    tokens = jax.random.randint(keys[-1], (B, L), 0, V, dtype=jnp.int32)

    params, meta = pack_params(conv_ws, conv_bs, lin_w, lin_b, L)

    # TODO(synk): train-mode dropout (stochastic masking) is not implemented;
    # this kernel is the eval-mode forward pass (dropout = identity).
    out = cnn_forward(tokens, embed_w, params, **meta)
    out = jax.block_until_ready(out)
    assert out.shape == (B, C), out.shape

    ref = reference_forward(tokens, embed_w, conv_ws, conv_bs, lin_w, lin_b)
    np.testing.assert_allclose(np.asarray(out), np.asarray(ref),
                               rtol=5e-2, atol=5e-2)

    print("KERNEL_OK")
</pallas_src>

<mosaic_0001>
module attributes {stable_mosaic.version = 11 : i64} {
  func.func @_cnn_kernel(%arg0: i32, %arg1: memref<32x1xi32, #tpu.memory_space<vmem>>, %arg2: memref<64x32xf32, #tpu.memory_space<vmem>>, %arg3: memref<208x24xf32, #tpu.memory_space<vmem>>, %arg4: memref<2x4xf32, #tpu.memory_space<vmem>>) attributes {dimension_semantics = [#tpu.dimension_semantics<arbitrary>], iteration_bounds = array<i64: 1>, scalar_prefetch = 0 : i64, scratch_operands = 0 : i64, tpu.core_type = #tpu.core_type<tc>, window_params = [{pipeline_mode = #tpu.pipeline_mode<synchronous>, transform_indices = @transform_0, window_bounds = array<i64: 32, 1>}, {pipeline_mode = #tpu.pipeline_mode<synchronous>, transform_indices = @transform_1, window_bounds = array<i64: 64, 32>}, {pipeline_mode = #tpu.pipeline_mode<synchronous>, transform_indices = @transform_2, window_bounds = array<i64: 208, 24>}, {pipeline_mode = #tpu.pipeline_mode<synchronous>, transform_indices = @transform_3, window_bounds = array<i64: 2, 4>}]} {
    %c0 = arith.constant 0 : index
    %c0_0 = arith.constant 0 : index
    %0 = vector.load %arg1[%c0, %c0_0] : memref<32x1xi32, #tpu.memory_space<vmem>>, vector<32x1xi32>
    %1 = tpu.iota {dimensions = array<i32: 1>} : vector<32x64xi32>
    %2 = vector.broadcast %0 : vector<32x1xi32> to vector<32x64xi32>
    %3 = arith.cmpi eq, %2, %1 : vector<32x64xi32>
    %4 = arith.extui %3 : vector<32x64xi1> to vector<32x64xi32>
    %5 = arith.sitofp %4 : vector<32x64xi32> to vector<32x64xf32>
    %c0_1 = arith.constant 0 : index
    %c0_2 = arith.constant 0 : index
    %6 = vector.load %arg2[%c0_1, %c0_2] : memref<64x32xf32, #tpu.memory_space<vmem>>, vector<64x32xf32>
    %cst = arith.constant dense<0.000000e+00> : vector<32x32xf32>
    %7 = tpu.matmul %5, %6, %cst {dimension_numbers = #tpu.dot_dimension_numbers<[1], [0], [0], [1], [0, 0, 1, 1], [], []>} : vector<32x64xf32>, vector<64x32xf32>, vector<32x32xf32> -> vector<32x32xf32>
    %8 = vector.shape_cast %7 : vector<32x32xf32> to vector<2x16x32xf32>
    %cst_3 = arith.constant 0.000000e+00 : f32
    %9 = vector.broadcast %cst_3 : f32 to vector<2x4x32xf32>
    %10 = tpu.concatenate %8, %9 in 1 : vector<2x16x32xf32>, vector<2x4x32xf32> -> vector<2x20x32xf32>
    %11 = vector.extract_strided_slice %10 {offsets = [0, 0, 0], sizes = [2, 16, 32], strides = [1, 1, 1]} : vector<2x20x32xf32> to vector<2x16x32xf32>
    %12 = vector.extract_strided_slice %10 {offsets = [0, 1, 0], sizes = [2, 16, 32], strides = [1, 1, 1]} : vector<2x20x32xf32> to vector<2x16x32xf32>
    %13 = vector.extract_strided_slice %10 {offsets = [0, 2, 0], sizes = [2, 16, 32], strides = [1, 1, 1]} : vector<2x20x32xf32> to vector<2x16x32xf32>
    %14 = vector.extract_strided_slice %10 {offsets = [0, 3, 0], sizes = [2, 16, 32], strides = [1, 1, 1]} : vector<2x20x32xf32> to vector<2x16x32xf32>
    %15 = vector.extract_strided_slice %10 {offsets = [0, 4, 0], sizes = [2, 16, 32], strides = [1, 1, 1]} : vector<2x20x32xf32> to vector<2x16x32xf32>
    %16 = tpu.concatenate %11, %12, %13, %14, %15 in 2 : vector<2x16x32xf32>, vector<2x16x32xf32>, vector<2x16x32xf32>, vector<2x16x32xf32>, vector<2x16x32xf32> -> vector<2x16x160xf32>
    %17 = vector.shape_cast %16 : vector<2x16x160xf32> to vector<32x160xf32>
    %c0_4 = arith.constant 0 : index
    %c0_5 = arith.constant 0 : index
    %18 = vector.load %arg3[%c0_4, %c0_5] : memref<208x24xf32, #tpu.memory_space<vmem>>, vector<160x24xf32>
    %cst_6 = arith.constant dense<0.000000e+00> : vector<32x24xf32>
    %19 = tpu.matmul %17, %18, %cst_6 {dimension_numbers = #tpu.dot_dimension_numbers<[1], [0], [0], [1], [0, 0, 1, 1], [], []>} : vector<32x160xf32>, vector<160x24xf32>, vector<32x24xf32> -> vector<32x24xf32>
    %c160 = arith.constant 160 : index
    %c0_7 = arith.constant 0 : index
    %20 = vector.load %arg3[%c160, %c0_7] : memref<208x24xf32, #tpu.memory_space<vmem>>, vector<16x24xf32>
    %21 = vector.shape_cast %19 : vector<32x24xf32> to vector<2x16x24xf32>
    %22 = vector.shape_cast %20 : vector<16x24xf32> to vector<1x16x24xf32>
    %23 = vector.broadcast %22 : vector<1x16x24xf32> to vector<2x16x24xf32>
    %24 = arith.addf %21, %23 : vector<2x16x24xf32>
    %cst_8 = arith.constant dense<0xFF800000> : vector<2x24xf32>
    %25 = vector.multi_reduction <maximumf>, %24, %cst_8 [1] : vector<2x16x24xf32> to vector<2x24xf32>
    %cst_9 = arith.constant 0.000000e+00 : f32
    %26 = vector.broadcast %cst_9 : f32 to vector<2x24xf32>
    %27 = arith.maximumf %25, %26 : vector<2x24xf32>
    %c176 = arith.constant 176 : index
    %c0_10 = arith.constant 0 : index
    %28 = vector.load %arg3[%c176, %c0_10] : memref<208x24xf32, #tpu.memory_space<vmem>>, vector<24x4xf32>
    %c200 = arith.constant 200 : index
    %c0_11 = arith.constant 0 : index
    %29 = vector.load %arg3[%c200, %c0_11] : memref<208x24xf32, #tpu.memory_space<vmem>>, vector<1x4xf32>
    %cst_12 = arith.constant dense<0.000000e+00> : vector<2x4xf32>
    %30 = tpu.matmul %27, %28, %cst_12 {dimension_numbers = #tpu.dot_dimension_numbers<[1], [0], [0], [1], [0, 0, 1, 1], [], []>} : vector<2x24xf32>, vector<24x4xf32>, vector<2x4xf32> -> vector<2x4xf32>
    %31 = vector.broadcast %29 : vector<1x4xf32> to vector<2x4xf32>
    %32 = arith.addf %30, %31 : vector<2x4xf32>
    %c0_13 = arith.constant 0 : index
    %c0_14 = arith.constant 0 : index
    %33 = vector.load %arg4[%c0_13, %c0_14] : memref<2x4xf32, #tpu.memory_space<vmem>>, vector<2x4xf32>
    tpu.vector_store %arg4[%c0_13, %c0_14], %32 {strides = array<i32>} : memref<2x4xf32, #tpu.memory_space<vmem>>, vector<2x4xf32>,
    return
  }
  func.func @transform_0(%arg0: i32) -> (i32, i32) {
    %c0_i32 = arith.constant 0 : i32
    %c0_i32_0 = arith.constant 0 : i32
    %c0_i32_1 = arith.constant 0 : i32
    return %c0_i32, %c0_i32_0 : i32, i32
  }
  func.func @transform_1(%arg0: i32) -> (i32, i32) {
    %c0_i32 = arith.constant 0 : i32
    %c0_i32_0 = arith.constant 0 : i32
    %c0_i32_1 = arith.constant 0 : i32
    return %c0_i32, %c0_i32_0 : i32, i32
  }
  func.func @transform_2(%arg0: i32) -> (i32, i32) {
    %c0_i32 = arith.constant 0 : i32
    %c0_i32_0 = arith.constant 0 : i32
    %c0_i32_1 = arith.constant 0 : i32
    return %c0_i32, %c0_i32_0 : i32, i32
  }
  func.func @transform_3(%arg0: i32) -> (i32, i32) {
    %c0_i32 = arith.constant 0 : i32
    %c0_i32_0 = arith.constant 0 : i32
    %c0_i32_1 = arith.constant 0 : i32
    return %c0_i32, %c0_i32_0 : i32, i32
  }
}

</mosaic_0001>

<bundles_post_ra>
// kernel: cnn_forward.1
= control target key start
LH: loop header
LB: loop body
LE: loop exit
PB: predicated region body
PF: predicated region fallthrough
CT: control target
= control target key end

     0   :  { %v436_v2 = vmov 0   ;;  %s652_s0 = inlined_call_operand.vmem [shape: s32[32,1], index: 0, kind: input, shape index: {}]   ;;  %s653_s1 = inlined_call_operand.vmem [shape: f32[64,32], index: 1, kind: input, shape index: {}]   ;;  %s654_s2 = inlined_call_operand.vmem [shape: f32[208,24], index: 2, kind: input, shape index: {}]   ;;  %s655_s3 = inlined_call_operand.hbm [shape: f32[2,4], index: 3, kind: output, shape index: {}]  }
   0x1   :  { %v15_v0 = vld [vmem:[%s652_s0] sm:$0xff]  ;;  %v17_v1 = vld [vmem:[%s652_s0 + $0x10] sm:$0xff]  ;;  %387 = vset.pattern.permute.xlu0 %v436_v2  ;;  %388 = vset.pattern.permute.xlu1 %v436_v2  ;;  %v52_v3 = vld [vmem:[%s653_s1 + $0x38] sm:$0xff] }
   0x2   :  { %22 = vperm.xlu0 %387, %v15_v0   ;;  %28 = vperm.xlu1 %388, %v17_v1   ;;  %v51_v4 = vld [vmem:[%s653_s1 + $0x30] sm:$0xff]  ;;  %v50_v5 = vld [vmem:[%s653_s1 + $0x28] sm:$0xff] }
   0x3   :  { %74 = vmatpush.msra.mxu0 %v52_v3 }
   0x4   :  { %8 = vsyncpa [#allocation3], 0  ;;  %v49_v6 = vld [vmem:[%s653_s1 + $0x20] sm:$0xff]  ;;  %v16_v7 = vld [vmem:[%s652_s0 + $0x8] sm:$0xff]  ;;  %v19_v13 = vlaneseq  ;;  %vm53_vm0 = vcmask 523264   ;;  %v437_v16 = vmov 0.0  }
   0x5   :  { %75 = vmatpush.msra.mxu0 %v51_v4  ;;  %v18_v8 = vld [vmem:[%s652_s0 + $0x18] sm:$0xff]  ;;  %v47_v10 = vld [vmem:[%s653_s1 + $0x10] sm:$0xff]  ;;  %v46_v11 = vld [vmem:[%s653_s1 + $0x8] sm:$0xff]  ;;  %vm166_vm5 = vcmask 1043456   ;;  %vm176_vm6 = vcmask 261120   ;;  %v170_v33 = vrot.slane %v437_v16, 4 }
   0x6   :  { %v48_v9 = vld [vmem:[%s653_s1 + $0x18] sm:$0xff]  ;;  %v45_v12 = vld [vmem:[%s653_s1] sm:$0xff]  ;;  %v20_v14 = vand.u32 127, %v19_v13  ;;  %v208_v25 = vld [vmem:[%s654_s2 + $0x90] sm:$0xff]  ;;  %v104_v38 = vrot.slane %v437_v16, 1  ;;  %vm144_vm7 = vcmask 1044480  }
   0x7   :  { %76 = vmatpush.msra.mxu0 %v50_v5  ;;  %v209_v24 = vld [vmem:[%s654_s2 + $0x98] sm:$0xff]  ;;  %v207_v26 = vld [vmem:[%s654_s2 + $0x88] sm:$0xff]  ;;  %v206_v27 = vld [vmem:[%s654_s2 + $0x80] sm:$0xff]  ;;  %vm100_vm8 = vcmask 1046528   ;;  %s438_s19 = smov 96   ;;  %s439_s20 = smov 32  }
   0x8   :  { %259 = vmatpush.msra.mxu2 %v209_v24  ;;  %v205_v39 = vld [vmem:[%s654_s2 + $0x78] sm:$0xff]  ;;  %v204_v40 = vld [vmem:[%s654_s2 + $0x70] sm:$0xff]  ;;  %vm122_vm9 = vcmask 1045504   ;;  %v126_v63 = vrot.slane %v437_v16, 2  ;;  %v148_v3 = vrot.slane %v437_v16, 3  ;;  %s440_s21 = smov 64  }
   0x9   :  { %77 = vmatpush.msra.mxu0 %v49_v6  ;;  %218 = vmatpush.msra.mxu1 %v205_v39  ;;  %v200_v13 = vld [vmem:[%s654_s2 + $0x50] sm:$0xff]  ;;  %vm185_vm10 = vcmask 785408   ;;  %vm282_vm11 = vcmask 195584   ;;  %vm310_vm12 = vcmask 1041409   ;;  %s441_s6 = smov [#allocation2]   ;;  %s343_s8 = sshll.u32 %s655_s3, 4  ;;  %s344_s8 = int_to_ptr.hbm [resolvable:$true] %s343_s8 }
   0xa   :  { %25 = vperm.xlu0 %387, %v16_v7   ;;  %31 = vperm.xlu1 %388, %v18_v8   ;;  %s341_s0 = sshll.u32 %s441_s6, 4  ;;  %vm334_vm13 = vcmask 25600   ;;  %s342_s0 = int_to_ptr.vmem [resolvable:$true] %s341_s0 }
   0xb   :  { %78 = vmatpush.msra.mxu0 %v48_v9  ;;  %260 = vmatpush.msra.mxu2 %v208_v25 }
   0xc   :  { %365 = vmatpush.msra.mxu3 %v205_v39  ;;  %219 = vmatpush.msra.mxu1 %v204_v40 }
   0xd   :  { %79 = vmatpush.msra.mxu0 %v47_v10  ;;  %261 = vmatpush.msra.mxu2 %v207_v26  ;;  %v203_v10 = vld [vmem:[%s654_s2 + $0x68] sm:$0xff] }
   0xe   :  { %366 = vmatpush.msra.mxu3 %v204_v40  ;;  %220 = vmatpush.msra.mxu1 %v203_v10 }
   0xf   :  { %80 = vmatpush.msra.mxu0 %v46_v11  ;;  %262 = vmatpush.msra.mxu2 %v206_v27  ;;  %v202_v11 = vld [vmem:[%s654_s2 + $0x60] sm:$0xff] }
  0x10   :  { %367 = vmatpush.msra.mxu3 %v203_v10  ;;  %221 = vmatpush.msra.mxu1 %v202_v11 }
  0x11   :  { %81 = vmatpush.msra.mxu0 %v45_v12  ;;  %v201_v12 = vld [vmem:[%s654_s2 + $0x58] sm:$0xff] }
  0x12   :  { %368 = vmatpush.msra.mxu3 %v202_v11  ;;  %222 = vmatpush.msra.mxu1 %v201_v12 }
  0x14   :  { %369 = vmatpush.msra.mxu3 %v201_v12  ;;  %223 = vmatpush.msra.mxu1 %v200_v13 }
  0x16   :  { %370 = vmatpush.msra.mxu3 %v200_v13 }
  0x74   :  { %v23_v15 = vpop.permute.xlu0 %22  ;;  %v29_v19 = vpop.permute.xlu1 %28 }
  0x75   :  { %vm33_vm1 = vcmp.eq.s32.totalorder %v23_v15, %v20_v14  ;;  %vm35_vm3 = vcmp.eq.s32.totalorder %v29_v19, %v20_v14  ;;  %v198_v15 = vld [vmem:[%s654_s2 + $0x40] sm:$0xff] }
  0x76   :  { %v352_v17 = vsel %vm33_vm1, 1.0, %v437_v16  ;;  %v354_v21 = vsel %vm35_vm3, 1.0, %v437_v16  ;;  %v194_v19 = vld [vmem:[%s654_s2 + $0x20] sm:$0xff] }
  0x77   :  { %356 = vmatmul.msk.f32.vlgmr.msra.gmra.mxu0 %vm53_vm0, %v352_v17  ;;  %v196_v17 = vld [vmem:[%s654_s2 + $0x30] sm:$0xff] }
  0x7c   :  { %v26_v18 = vpop.permute.xlu0 %25  ;;  %v32_v22 = vpop.permute.xlu1 %31 }
  0x7d   :  { %vm34_vm2 = vcmp.eq.s32.totalorder %v26_v18, %v20_v14  ;;  %vm36_vm4 = vcmp.eq.s32.totalorder %v32_v22, %v20_v14  ;;  %v199_v14 = vld [vmem:[%s654_s2 + $0x48] sm:$0xff] }
  0x7e   :  { %v353_v20 = vsel %vm34_vm2, 1.0, %v437_v16  ;;  %v355_v23 = vsel %vm36_vm4, 1.0, %v437_v16  ;;  %224 = vmatpush.msra.mxu1 %v199_v14  ;;  %371 = vmatpush.msra.mxu3 %v199_v14  ;;  %v197_v16 = vld [vmem:[%s654_s2 + $0x38] sm:$0xff]  ;;  %v195_v18 = vld [vmem:[%s654_s2 + $0x28] sm:$0xff] }
  0x7f   :  { %357 = vmatmul.msk.f32.gmra.mxu0 %vm53_vm0, %v353_v20  ;;  %v193_v20 = vld [vmem:[%s654_s2 + $0x18] sm:$0xff]  ;;  %v191_v22 = vld [vmem:[%s654_s2 + $0x8] sm:$0xff] }
  0x80   :  { %225 = vmatpush.msra.mxu1 %v198_v15  ;;  %372 = vmatpush.msra.mxu3 %v198_v15 }
  0x82   :  { %226 = vmatpush.msra.mxu1 %v197_v16  ;;  %373 = vmatpush.msra.mxu3 %v197_v16 }
  0x84   :  { %227 = vmatpush.msra.mxu1 %v196_v17  ;;  %374 = vmatpush.msra.mxu3 %v196_v17 }
  0x86   :  { %228 = vmatpush.msra.mxu1 %v195_v18  ;;  %375 = vmatpush.msra.mxu3 %v195_v18 }
  0x87   :  { %358 = vmatmul.msk.f32.gmra.mxu0 %vm53_vm0, %v354_v21  ;;  %v192_v21 = vld [vmem:[%s654_s2 + $0x10] sm:$0xff] }
  0x88   :  { %229 = vmatpush.msra.mxu1 %v194_v19  ;;  %376 = vmatpush.msra.mxu3 %v194_v19 }
  0x8a   :  { %230 = vmatpush.msra.mxu1 %v193_v20  ;;  %377 = vmatpush.msra.mxu3 %v193_v20 }
  0x8c   :  { %231 = vmatpush.msra.mxu1 %v192_v21  ;;  %378 = vmatpush.msra.mxu3 %v192_v21 }
  0x8e   :  { %232 = vmatpush.msra.mxu1 %v191_v22  ;;  %379 = vmatpush.msra.mxu3 %v191_v22 }
  0x8f   :  { %359 = vmatmul.msk.f32.gmra.mxu0 %vm53_vm0, %v355_v23  ;;  %v190_v23 = vld [vmem:[%s654_s2] sm:$0xff] }
  0x90   :  { %233 = vmatpush.msra.mxu1 %v190_v23  ;;  %380 = vmatpush.msra.mxu3 %v190_v23 }
  0xf4   :  { %v518_v28 = vpop.f32.mrf.mxu0 }
  0xf5   :  { %v167_v30 = vrot.slane %v518_v28, 4  ;;  %v145_v41 = vrot.slane %v518_v28, 3  ;;  %v101_v45 = vrot.slane %v518_v28, 1  ;;  %v123_v0 = vrot.slane %v518_v28, 2 }
  0xfc   :  { %v520_v29 = vpop.f32.mrf.mxu0 }
  0xfd   :  { %v168_v31 = vrot.slane %v520_v29, 4  ;;  %v102_v36 = vrot.slane %v520_v29, 1  ;;  %v146_v37 = vrot.slane %v520_v29, 3  ;;  %v124_v62 = vrot.slane %v520_v29, 2 }
  0xff   :  { %v169_v32 = vsel %vm166_vm5, %v167_v30, %v168_v31  ;;  %v171_v35 = vsel %vm166_vm5, %v168_v31, %v170_v33  ;;  %v147_v50 = vsel %vm144_vm7, %v145_v41, %v146_v37  ;;  %v105_v51 = vsel %vm100_vm8, %v102_v36, %v104_v38 }
 0x100   :  { %360 = vmatmul.msk.f32.vlgmr.msra.gmra.mxu2 %vm176_vm6, %v169_v32  ;;  %v103_v52 = vsel %vm100_vm8, %v101_v45, %v102_v36  ;;  %v125_v4 = vsel %vm122_vm9, %v123_v0, %v124_v62  ;;  %v127_v6 = vsel %vm122_vm9, %v124_v62, %v126_v63  ;;  %v149_v9 = vsel %vm144_vm7, %v146_v37, %v148_v3 }
 0x104   :  { %v527_v34 = vpop.f32.mrf.mxu0 }
 0x105   :  { %v150_v42 = vrot.slane %v527_v34, 3  ;;  %v172_v44 = vrot.slane %v527_v34, 4  ;;  %v106_v49 = vrot.slane %v527_v34, 1  ;;  %v128_v61 = vrot.slane %v527_v34, 2 }
 0x108   :  { %361 = vmatmul.msk.f32.gmra.mxu2 %vm176_vm6, %v171_v35 }
 0x10c   :  { %v542_v43 = vpop.f32.mrf.mxu0 }
 0x10d   :  { %v107_v46 = vrot.slane %v542_v43, 1  ;;  %v151_v47 = vrot.slane %v542_v43, 3  ;;  %v173_v48 = vrot.slane %v542_v43, 4  ;;  %v129_v60 = vrot.slane %v542_v43, 2 }
 0x10f   :  { %v174_v53 = vsel %vm166_vm5, %v172_v44, %v173_v48  ;;  %v152_v54 = vsel %vm144_vm7, %v150_v42, %v151_v47  ;;  %v109_v55 = vsel %vm100_vm8, %v107_v46, %v104_v38  ;;  %v108_v56 = vsel %vm100_vm8, %v106_v49, %v107_v46 }
 0x110   :  { %362 = vmatmul.msk.f32.gmra.mxu2 %vm176_vm6, %v174_v53  ;;  %v399_v57 = vpack.i.bf16 %v147_v50, %v152_v54  ;;  %v404_v58 = vpack.i.bf16 %v105_v51, %v109_v55  ;;  %v389_v59 = vpack.i.bf16 %v103_v52, %v108_v56  ;;  %v130_v1 = vsel %vm122_vm9, %v128_v61, %v129_v60  ;;  %v303_v56 = vld [vmem:[%s654_s2 + $0xb0] sm:$0xff] }
 0x111   :  { %v175_v2 = vsel %vm166_vm5, %v173_v48, %v170_v33  ;;  %v153_v5 = vsel %vm144_vm7, %v151_v47, %v148_v3  ;;  %v394_v7 = vpack.i.bf16 %v125_v4, %v130_v1  ;;  %v131_v8 = vsel %vm122_vm9, %v129_v60, %v126_v63  ;;  %v276_v60 = vld [vmem:[%s654_s2 + $0xa0] sm:$0xff]  ;;  %v277_v63 = vld [vmem:[%s654_s2 + $0xa8] sm:$0xff] }
 0x112   :  { %400 = vrot.lane.b32.xlu0 %v399_v57, %s438_s19  ;;  %405 = vrot.lane.b32.xlu1 %v404_v58, %s439_s20 }
 0x113   :  { %390 = vrot.lane.b32.xlu2 %v389_v59, %s439_s20 }
 0x118   :  { %363 = vmatmul.msk.f32.gmra.mxu2 %vm176_vm6, %v175_v2 }
 0x11a   :  { %160 = vrot.lane.b32.xlu0 %v153_v5, %s438_s19  ;;  %134 = vrot.lane.b32.xlu1 %v127_v6, %s440_s21 }
 0x11b   :  { %395 = vrot.lane.b32.xlu2 %v394_v7, %s440_s21 }
 0x123   :  { %138 = vrot.lane.b32.xlu2 %v131_v8, %s440_s21 }
 0x12b   :  { %156 = vrot.lane.b32.xlu2 %v149_v9, %s438_s19 }
 0x16d   :  { %v391_v24 = vpop.permute.xlu2 %390 }
 0x16e   :  { %v393_v26 = vunpack.i.h.bf16 %v391_v24  ;;  %v392_v27 = vunpack.i.l.bf16 %v391_v24 }
 0x170   :  { %v177_v38 = vsel %vm176_vm6, %v518_v28, %v393_v26  ;;  %v179_v39 = vsel %vm176_vm6, %v527_v34, %v392_v27 }
 0x175   :  { %v396_v25 = vpop.permute.xlu2 %395 }
 0x176   :  { %v398_v30 = vunpack.i.h.bf16 %v396_v25  ;;  %v397_v31 = vunpack.i.l.bf16 %v396_v25 }
 0x178   :  { %v181_v40 = vsel %vm53_vm0, %v177_v38, %v398_v30  ;;  %v183_v41 = vsel %vm53_vm0, %v179_v39, %v397_v31 }
 0x17d   :  { %v139_v32 = vpop.permute.xlu2 %138 }
 0x183   :  { %v264_v54 = vpop.f32.mrf.mxu2 }
 0x184   :  { %v401_v33 = vpop.permute.xlu0 %400  ;;  %v406_v35 = vpop.permute.xlu1 %405 }
 0x185   :  { %v403_v36 = vunpack.i.h.bf16 %v401_v33  ;;  %v402_v37 = vunpack.i.l.bf16 %v401_v33  ;;  %v407_v42 = vunpack.i.l.bf16 %v406_v35  ;;  %v408_v46 = vunpack.i.h.bf16 %v406_v35  ;;  %v157_v49 = vpop.permute.xlu2 %156 }
 0x187   :  { %v186_v44 = vsel %vm185_vm10, %v181_v40, %v403_v36  ;;  %v188_v45 = vsel %vm185_vm10, %v183_v41, %v402_v37  ;;  %v180_v47 = vsel %vm176_vm6, %v542_v43, %v407_v42  ;;  %v178_v34 = vsel %vm176_vm6, %v520_v29, %v408_v46  ;;  %v305_v43 = vld [vmem:[%s654_s2 + $0xc0] sm:$0xff]  ;;  %v304_v29 = vld [vmem:[%s654_s2 + $0xb8] sm:$0xff] }
 0x188   :  { %234 = vmatmul.f32.vlgmr.msra.gmra.mxu1 %v186_v44  ;;  %240 = vmatmul.f32.vlgmr.msra.gmra.mxu3 %v188_v45  ;;  %v184_v52 = vsel %vm53_vm0, %v180_v47, %v139_v32  ;;  %v409_v32 = vld [vmem:[%s654_s2 + $0xc8] ss:$0 sm:$0xff] }
 0x189   :  { %327 = vmatpush.msrb.mxu2 %v305_v43 }
 0x18b   :  { %v267_v55 = vpop.f32.mrf.mxu2  ;;  %328 = vmatpush.msrb.mxu2 %v304_v29 }
 0x18c   :  { %v161_v48 = vpop.permute.xlu0 %160  ;;  %v135_v28 = vpop.permute.xlu1 %134 }
 0x18d   :  { %v182_v50 = vsel %vm53_vm0, %v178_v34, %v135_v28  ;;  %v189_v53 = vsel %vm185_vm10, %v184_v52, %v161_v48  ;;  %329 = vmatpush.msrb.mxu2 %v303_v56 }
 0x18e   :  { %v187_v51 = vsel %vm185_vm10, %v182_v50, %v157_v49 }
 0x190   :  { %237 = vmatmul.f32.gmra.mxu1 %v187_v51  ;;  %243 = vmatmul.f32.gmra.mxu3 %v189_v53 }
 0x193   :  { %v270_v58 = vpop.f32.mrf.mxu2 }
 0x19b   :  { %v273_v6 = vpop.f32.mrf.mxu2 }
 0x205   :  { %v235_v57 = vpop.f32.mrf.mxu1 }
 0x206   :  { %v265_v59 = vadd.f32 %v264_v54, %v235_v57 }
 0x208   :  { %v278_v0 = vadd.f32 %v276_v60, %v265_v59 }
 0x20a   :  { %v283_v4 = vsel %vm282_vm11, %v278_v0, -inf }
 0x20b   :  { %v241_v61 = vpop.f32.mrf.mxu3 }
 0x20c   :  { %v271_v2 = vadd.f32 %v270_v58, %v241_v61 }
 0x20d   :  { %v238_v62 = vpop.f32.mrf.mxu1 }
 0x20e   :  { %v268_v1 = vadd.f32 %v267_v55, %v238_v62  ;;  %v280_v9 = vadd.f32 %v276_v60, %v271_v2 }
 0x210   :  { %v279_v3 = vadd.f32 %v277_v63, %v268_v1  ;;  %v292_v14 = vsel %vm282_vm11, %v280_v9, -inf }
 0x212   :  { %v284_v5 = vsel %vm282_vm11, %v279_v3, -inf }
 0x213   :  { %v285_v7 = vmax.f32 %v283_v4, %v284_v5  ;;  %v244_v8 = vpop.f32.mrf.mxu3 }
 0x214   :  { %v274_v10 = vadd.f32 %v273_v6, %v244_v8 }
 0x215   :  { %v286_v11 = vrot.slane %v285_v7, 4 }
 0x216   :  { %v281_v12 = vadd.f32 %v277_v63, %v274_v10 }
 0x217   :  { %v287_v13 = vmax.f32 %v285_v7, %v286_v11 }
 0x218   :  { %v293_v15 = vsel %vm282_vm11, %v281_v12, -inf }
 0x219   :  { %v288_v16 = vrot.slane %v287_v13, 2  ;;  %v294_v17 = vmax.f32 %v292_v14, %v293_v15 }
 0x21b   :  { %v289_v18 = vmax.f32 %v287_v13, %v288_v16  ;;  %v295_v19 = vrot.slane %v294_v17, 4 }
 0x21d   :  { %v296_v20 = vmax.f32 %v294_v17, %v295_v19  ;;  %v290_v22 = vrot.slane %v289_v18, 1 }
 0x21f   :  { %v297_v21 = vrot.slane %v296_v20, 2  ;;  %v291_v24 = vmax.f32 %v289_v18, %v290_v22 }
 0x221   :  { %v298_v23 = vmax.f32 %v296_v20, %v297_v21  ;;  %v301_v27 = vmax.f32 %v291_v24, 0.0 }
 0x223   :  { %v299_v25 = vrot.slane %v298_v23, 1 }
 0x225   :  { %v300_v26 = vmax.f32 %v298_v23, %v299_v25 }
 0x227   :  { %v302_v30 = vmax.f32 %v300_v26, 0.0 }
 0x229   :  { %v311_v31 = vsel %vm310_vm12, %v302_v30, %v301_v27 }
 0x22a   :  { %364 = vmatmul.msk.f32.vlgmr.msrb.gmra.mxu2 %vm282_vm11, %v311_v31 }
 0x2ad   :  { %v331_v33 = vpop.f32.mrf.mxu2 }
 0x2ae   :  { %v332_v35 = vadd.f32 %v409_v32, %v331_v33 }
 0x2b0   :  { %335 = vst.msk [vmem:[#allocation2] sm:$0x3] %vm334_vm13, %v332_v35 }
 0x2b1   :  { %346 = dma.vmem_to_hbm [thread:$0]  %s342_s0, 32, %s344_s8, [#allocation3]  }
 0x2b2   :  { %434 = dma.done.wait [#allocation3], 32  }
 0x2b3   :  { %435 = vsyncadd [#allocation3], 4294967264 }
 0x2b4   :  { %351 = vsyncpa [#allocation3], 1 }

</bundles_post_ra>
